<compile_context>
chip_gen: v5e
topology: v5e:2x2
jax: 0.10.0
libtpu: 0.0.40
codegen_flags: <defaults>
</compile_context>

<pallas_src>
import jax
import jax.numpy as jnp
from jax import lax
from jax.experimental import pallas as pl
from jax.experimental.pallas import tpu as pltpu

EMB_DIM = 384   # GIST-small-Embedding-v0 sentence embedding dimension
OUT_DIM = 8     # output_dim in the PyTorch module


def _round_up(x: int, m: int) -> int:
    return ((x + m - 1) // m) * m


def _cdiv(a: int, b: int) -> int:
    return (a + b - 1) // b


def fc_kernel(x_ref, w_ref, b_ref, o_ref):
    # x_ref: (TB, D) VMEM activation tile (per-step DMA)
    # w_ref: (D, OUT_DIM) VMEM, resident; b_ref: (1, OUT_DIM) VMEM, resident
    # o_ref: (TB, OUT_DIM) VMEM output tile
    x = x_ref[...]
    # Fused L2 normalization (what encode(..., normalize_embeddings=True) does).
    # Zero-padded rows -> inv_norm finite (eps), row stays 0; ragged/garbage boundary rows
    # only affect their own (masked) output rows.
    inv_norm = lax.rsqrt(jnp.sum(x * x, axis=-1, keepdims=True) + 1e-12)
    xn = x * inv_norm
    acc = jnp.dot(xn, w_ref[...], preferred_element_type=jnp.float32)  # MXU, f32 accumulate
    o_ref[...] = (acc + b_ref[...]).astype(o_ref.dtype)


def extended_model_head(embeddings: jax.Array, weight: jax.Array, bias: jax.Array,
                        *, tile_b: int = 2048) -> jax.Array:
    """embeddings: (B, D) f32 raw embeddings, weight: (OUT, D) f32 (PyTorch layout), bias: (OUT,)."""
    B, D = embeddings.shape
    out_dim = weight.shape[0]

    # Pad the batch only to the f32 sublane multiple (8): at most 7 dead rows.
    B8 = _round_up(B, 8)
    if B8 != B:
        embeddings = jnp.pad(embeddings, ((0, B8 - B), (0, 0)))

    # Batch tile: as large as possible (amortize per-step overhead), but keep >=2 blocks for
    # non-trivial batches so the "parallel" grid axis can shard across v7x's two TensorCores.
    TB = min(tile_b, B8)
    if TB == B8 and B8 > 1024:
        TB = _round_up((B8 + 1) // 2, 8)
    grid = (_cdiv(B8, TB),)

    w_t = weight.T.astype(jnp.float32)                       # (D, out_dim), resident in VMEM
    b_row = bias.reshape(1, out_dim).astype(jnp.float32)     # (1, out_dim), resident in VMEM

    out = pl.pallas_call(
        fc_kernel,
        out_shape=jax.ShapeDtypeStruct((B8, out_dim), jnp.float32),
        grid=grid,
        in_specs=[
            pl.BlockSpec((TB, D), lambda i: (i, 0)),          # activation tile: per-step DMA
            pl.BlockSpec((D, out_dim), lambda i: (0, 0)),     # weight: resident
            pl.BlockSpec((1, out_dim), lambda i: (0, 0)),     # bias: resident
        ],
        out_specs=pl.BlockSpec((TB, out_dim), lambda i: (i, 0)),
        compiler_params=pltpu.CompilerParams(
            dimension_semantics=("parallel",),
        ),
        cost_estimate=pl.CostEstimate(
            flops=2 * B8 * D * out_dim + 3 * B8 * D,          # matmul + fused normalize
            transcendentals=B8,                               # one rsqrt per row
            bytes_accessed=B8 * D * 4 + D * out_dim * 4 + out_dim * 4 + B8 * out_dim * 4,
        ),
    )(embeddings, w_t, b_row)

    return out if B8 == B else out[:B]


if __name__ == "__main__":
    key = jax.random.PRNGKey(0)
    k_emb, k_w, k_b = jax.random.split(key, 3)

    B = 2  # batch of "sentences"

    # TODO(synk): base_model.encode (tokenizer + pretrained GIST-small transformer) is not
    # implemented; synthetic raw embeddings stand in for its pre-normalization output.
    emb = jax.random.normal(k_emb, (B, EMB_DIM), dtype=jnp.float32)

    # Deterministic nn.Linear(384, 8) init (PyTorch default: U(-1/sqrt(fan_in), 1/sqrt(fan_in)))
    bound = 1.0 / (EMB_DIM ** 0.5)
    weight = jax.random.uniform(k_w, (OUT_DIM, EMB_DIM), jnp.float32, -bound, bound)
    bias = jax.random.uniform(k_b, (OUT_DIM,), jnp.float32, -bound, bound)

    out = extended_model_head(emb, weight, bias)
    out = jax.block_until_ready(out)

    # correctness check against plain-JAX reference (normalize + linear)
    emb_n = emb / jnp.linalg.norm(emb, axis=-1, keepdims=True)
    ref = emb_n @ weight.T + bias
    assert out.shape == (B, OUT_DIM)
    assert jnp.allclose(out, ref, atol=2e-5, rtol=2e-5)

    print("KERNEL_OK")
</pallas_src>

<mosaic_0001>
module attributes {stable_mosaic.version = 11 : i64} {
  func.func @fc_kernel(%arg0: i32, %arg1: memref<8x384xf32, #tpu.memory_space<vmem>>, %arg2: memref<384x8xf32, #tpu.memory_space<vmem>>, %arg3: memref<1x8xf32, #tpu.memory_space<vmem>>, %arg4: memref<8x8xf32, #tpu.memory_space<vmem>>) attributes {dimension_semantics = [#tpu.dimension_semantics<parallel>], iteration_bounds = array<i64: 1>, scalar_prefetch = 0 : i64, scratch_operands = 0 : i64, tpu.core_type = #tpu.core_type<tc>, window_params = [{transform_indices = @transform_0, window_bounds = array<i64: 8, 384>}, {pipeline_mode = #tpu.pipeline_mode<synchronous>, transform_indices = @transform_1, window_bounds = array<i64: 384, 8>}, {pipeline_mode = #tpu.pipeline_mode<synchronous>, transform_indices = @transform_2, window_bounds = array<i64: 1, 8>}, {transform_indices = @transform_3, window_bounds = array<i64: 8, 8>}]} {
    %c0 = arith.constant 0 : index
    %c0_0 = arith.constant 0 : index
    %0 = vector.load %arg1[%c0, %c0_0] : memref<8x384xf32, #tpu.memory_space<vmem>>, vector<8x384xf32>
    %1 = arith.mulf %0, %0 : vector<8x384xf32>
    %cst = arith.constant dense<0.000000e+00> : vector<8xf32>
    %2 = vector.multi_reduction <add>, %1, %cst [1] : vector<8x384xf32> to vector<8xf32>
    %3 = vector.shape_cast %2 : vector<8xf32> to vector<8x1xf32>
    %cst_1 = arith.constant 9.99999996E-13 : f32
    %4 = vector.broadcast %cst_1 : f32 to vector<8x1xf32>
    %5 = arith.addf %3, %4 : vector<8x1xf32>
    %6 = math.rsqrt %5 : vector<8x1xf32>
    %7 = vector.broadcast %6 : vector<8x1xf32> to vector<8x384xf32>
    %8 = arith.mulf %0, %7 : vector<8x384xf32>
    %c0_2 = arith.constant 0 : index
    %c0_3 = arith.constant 0 : index
    %9 = vector.load %arg2[%c0_2, %c0_3] : memref<384x8xf32, #tpu.memory_space<vmem>>, vector<384x8xf32>
    %cst_4 = arith.constant dense<0.000000e+00> : vector<8x8xf32>
    %10 = tpu.matmul %8, %9, %cst_4 {dimension_numbers = #tpu.dot_dimension_numbers<[1], [0], [0], [1], [0, 0, 1, 1], [], []>} : vector<8x384xf32>, vector<384x8xf32>, vector<8x8xf32> -> vector<8x8xf32>
    %c0_5 = arith.constant 0 : index
    %c0_6 = arith.constant 0 : index
    %11 = vector.load %arg3[%c0_5, %c0_6] : memref<1x8xf32, #tpu.memory_space<vmem>>, vector<1x8xf32>
    %12 = vector.broadcast %11 : vector<1x8xf32> to vector<8x8xf32>
    %13 = arith.addf %10, %12 : vector<8x8xf32>
    %c0_7 = arith.constant 0 : index
    %c0_8 = arith.constant 0 : index
    %14 = vector.load %arg4[%c0_7, %c0_8] : memref<8x8xf32, #tpu.memory_space<vmem>>, vector<8x8xf32>
    tpu.vector_store %arg4[%c0_7, %c0_8], %13 {strides = array<i32>} : memref<8x8xf32, #tpu.memory_space<vmem>>, vector<8x8xf32>,
    return
  }
  func.func @transform_0(%arg0: i32) -> (i32, i32) {
    %c0_i32 = arith.constant 0 : i32
    %c0_i32_0 = arith.constant 0 : i32
    return %arg0, %c0_i32 : i32, i32
  }
  func.func @transform_1(%arg0: i32) -> (i32, i32) {
    %c0_i32 = arith.constant 0 : i32
    %c0_i32_0 = arith.constant 0 : i32
    %c0_i32_1 = arith.constant 0 : i32
    return %c0_i32, %c0_i32_0 : i32, i32
  }
  func.func @transform_2(%arg0: i32) -> (i32, i32) {
    %c0_i32 = arith.constant 0 : i32
    %c0_i32_0 = arith.constant 0 : i32
    %c0_i32_1 = arith.constant 0 : i32
    return %c0_i32, %c0_i32_0 : i32, i32
  }
  func.func @transform_3(%arg0: i32) -> (i32, i32) {
    %c0_i32 = arith.constant 0 : i32
    %c0_i32_0 = arith.constant 0 : i32
    return %arg0, %c0_i32 : i32, i32
  }
}

</mosaic_0001>

<bundles_post_ra>
// kernel: tpu_custom_call.1
= control target key start
LH: loop header
LB: loop body
LE: loop exit
PB: predicated region body
PF: predicated region fallthrough
CT: control target
= control target key end

     0   :  { %s394_s0 = inlined_call_operand.vmem [shape: f32[8,384], index: 0, kind: input, shape index: {}]   ;;  %s395_s1 = inlined_call_operand.vmem [shape: f32[384,8], index: 1, kind: input, shape index: {}]   ;;  %s396_s2 = inlined_call_operand.vmem [shape: f32[1,8], index: 2, kind: input, shape index: {}]   ;;  %s397_s3 = inlined_call_operand.hbm [shape: f32[8,8], index: 3, kind: output, shape index: {}]  }
   0x1   :  { %v223_v0 = vld [vmem:[%s394_s0] sm:$0xff]  ;;  %v228_v1 = vld [vmem:[%s394_s0 + $0x8] sm:$0xff]  ;;  %v233_v2 = vld [vmem:[%s394_s0 + $0x10] sm:$0xff] }
   0x2   :  { %v18_v3 = vmul.f32 %v223_v0, %v223_v0  ;;  %v19_v4 = vmul.f32 %v228_v1, %v228_v1  ;;  %v20_v5 = vmul.f32 %v233_v2, %v233_v2  ;;  %v54_v6 = vld [vmem:[%s395_s1 + $0x78] sm:$0xff]  ;;  %v53_v9 = vld [vmem:[%s395_s1 + $0x70] sm:$0xff]  ;;  %v52_v13 = vld [vmem:[%s395_s1 + $0x68] sm:$0xff] }
   0x3   :  { %v70_v7 = vld [vmem:[%s395_s1 + $0xf8] sm:$0xff]  ;;  %91 = vmatpush.msra.mxu0 %v54_v6  ;;  %v69_v10 = vld [vmem:[%s395_s1 + $0xf0] sm:$0xff]  ;;  %v68_v14 = vld [vmem:[%s395_s1 + $0xe8] sm:$0xff] }
   0x4   :  { %v86_v8 = vld [vmem:[%s395_s1 + $0x178] sm:$0xff]  ;;  %111 = vmatpush.msra.mxu1 %v70_v7  ;;  %v85_v11 = vld [vmem:[%s395_s1 + $0x170] sm:$0xff]  ;;  %v21_v12 = vadd.f32 %v19_v4, %v18_v3  ;;  %v84_v15 = vld [vmem:[%s395_s1 + $0x168] sm:$0xff] }
   0x5   :  { %131 = vmatpush.msra.mxu2 %v86_v8  ;;  %92 = vmatpush.msra.mxu0 %v53_v9  ;;  %v51_v16 = vld [vmem:[%s395_s1 + $0x60] sm:$0xff] }
   0x6   :  { %112 = vmatpush.msra.mxu1 %v69_v10  ;;  %v22_v17 = vadd.f32 %v21_v12, %v20_v5  ;;  %v67_v18 = vld [vmem:[%s395_s1 + $0xe0] sm:$0xff] }
   0x7   :  { %132 = vmatpush.msra.mxu2 %v85_v11 }
   0x8   :  { %8 = vsyncpa [#allocation3], 0  ;;  %93 = vmatpush.msra.mxu0 %v52_v13  ;;  %113 = vmatpush.msra.mxu1 %v68_v14  ;;  %v83_v19 = vld [vmem:[%s395_s1 + $0x160] sm:$0xff]  ;;  %v50_v20 = vld [vmem:[%s395_s1 + $0x58] sm:$0xff]  ;;  %s199_s30 = smov [#allocation2]   ;;  %s160_s7 = sshll.u32 %s397_s3, 4  ;;  %s161_s7 = int_to_ptr.hbm [resolvable:$true] %s160_s7 }
   0x9   :  { %23 = vadd.xlane.f32.xlu0 %v22_v17  ;;  %133 = vmatpush.msra.mxu2 %v84_v15  ;;  %v66_v21 = vld [vmem:[%s395_s1 + $0xd8] sm:$0xff]  ;;  %v49_v23 = vld [vmem:[%s395_s1 + $0x50] sm:$0xff]  ;;  %v48_v26 = vld [vmem:[%s395_s1 + $0x48] sm:$0xff]  ;;  %s158_s4 = sshll.u32 %s199_s30, 4  ;;  %vm151_vm3 = vcmask 64512   ;;  %s159_s4 = int_to_ptr.vmem [resolvable:$true] %s158_s4 }
   0xa   :  { %94 = vmatpush.msra.mxu0 %v51_v16  ;;  %114 = vmatpush.msra.mxu1 %v67_v18  ;;  %v82_v22 = vld [vmem:[%s395_s1 + $0x158] sm:$0xff]  ;;  %v65_v24 = vld [vmem:[%s395_s1 + $0xd0] sm:$0xff]  ;;  %v64_v27 = vld [vmem:[%s395_s1 + $0xc8] sm:$0xff] }
   0xb   :  { %134 = vmatpush.msra.mxu2 %v83_v19  ;;  %v81_v25 = vld [vmem:[%s395_s1 + $0x150] sm:$0xff]  ;;  %v80_v28 = vld [vmem:[%s395_s1 + $0x148] sm:$0xff]  ;;  %v47_v29 = vld [vmem:[%s395_s1 + $0x40] sm:$0xff] }
   0xc   :  { %95 = vmatpush.msra.mxu0 %v50_v20  ;;  %115 = vmatpush.msra.mxu1 %v66_v21  ;;  %v63_v30 = vld [vmem:[%s395_s1 + $0xc0] sm:$0xff]  ;;  %v46_v32 = vld [vmem:[%s395_s1 + $0x38] sm:$0xff]  ;;  %v45_v35 = vld [vmem:[%s395_s1 + $0x30] sm:$0xff] }
   0xd   :  { %135 = vmatpush.msra.mxu2 %v82_v22  ;;  %v79_v31 = vld [vmem:[%s395_s1 + $0x140] sm:$0xff]  ;;  %v62_v33 = vld [vmem:[%s395_s1 + $0xb8] sm:$0xff]  ;;  %v61_v36 = vld [vmem:[%s395_s1 + $0xb0] sm:$0xff] }
   0xe   :  { %96 = vmatpush.msra.mxu0 %v49_v23  ;;  %116 = vmatpush.msra.mxu1 %v65_v24  ;;  %v78_v34 = vld [vmem:[%s395_s1 + $0x138] sm:$0xff]  ;;  %v77_v37 = vld [vmem:[%s395_s1 + $0x130] sm:$0xff]  ;;  %v44_v38 = vld [vmem:[%s395_s1 + $0x28] sm:$0xff] }
   0xf   :  { %136 = vmatpush.msra.mxu2 %v81_v25  ;;  %v60_v39 = vld [vmem:[%s395_s1 + $0xa8] sm:$0xff]  ;;  %v43_v41 = vld [vmem:[%s395_s1 + $0x20] sm:$0xff]  ;;  %v42_v44 = vld [vmem:[%s395_s1 + $0x18] sm:$0xff] }
  0x10   :  { %97 = vmatpush.msra.mxu0 %v48_v26  ;;  %117 = vmatpush.msra.mxu1 %v64_v27  ;;  %v76_v40 = vld [vmem:[%s395_s1 + $0x128] sm:$0xff]  ;;  %v59_v42 = vld [vmem:[%s395_s1 + $0xa0] sm:$0xff]  ;;  %v58_v45 = vld [vmem:[%s395_s1 + $0x98] sm:$0xff] }
  0x11   :  { %137 = vmatpush.msra.mxu2 %v80_v28  ;;  %v75_v43 = vld [vmem:[%s395_s1 + $0x120] sm:$0xff]  ;;  %v74_v46 = vld [vmem:[%s395_s1 + $0x118] sm:$0xff]  ;;  %v41_v47 = vld [vmem:[%s395_s1 + $0x10] sm:$0xff] }
  0x12   :  { %98 = vmatpush.msra.mxu0 %v47_v29  ;;  %118 = vmatpush.msra.mxu1 %v63_v30  ;;  %v57_v48 = vld [vmem:[%s395_s1 + $0x90] sm:$0xff]  ;;  %v40_v50 = vld [vmem:[%s395_s1 + $0x8] sm:$0xff]  ;;  %v39_v53 = vld [vmem:[%s395_s1] sm:$0xff] }
  0x13   :  { %138 = vmatpush.msra.mxu2 %v79_v31  ;;  %v73_v49 = vld [vmem:[%s395_s1 + $0x110] sm:$0xff]  ;;  %v56_v51 = vld [vmem:[%s395_s1 + $0x88] sm:$0xff]  ;;  %v55_v54 = vld [vmem:[%s395_s1 + $0x80] sm:$0xff] }
  0x14   :  { %99 = vmatpush.msra.mxu0 %v46_v32  ;;  %119 = vmatpush.msra.mxu1 %v62_v33  ;;  %v72_v52 = vld [vmem:[%s395_s1 + $0x108] sm:$0xff]  ;;  %v71_v55 = vld [vmem:[%s395_s1 + $0x100] sm:$0xff] }
  0x15   :  { %139 = vmatpush.msra.mxu2 %v78_v34  ;;  %v170_v7 = vld [vmem:[%s396_s2] ss:$0 sm:$0xff] }
  0x16   :  { %100 = vmatpush.msra.mxu0 %v45_v35  ;;  %120 = vmatpush.msra.mxu1 %v61_v36 }
  0x17   :  { %140 = vmatpush.msra.mxu2 %v77_v37 }
  0x18   :  { %101 = vmatpush.msra.mxu0 %v44_v38  ;;  %121 = vmatpush.msra.mxu1 %v60_v39 }
  0x19   :  { %141 = vmatpush.msra.mxu2 %v76_v40 }
  0x1a   :  { %102 = vmatpush.msra.mxu0 %v43_v41  ;;  %122 = vmatpush.msra.mxu1 %v59_v42 }
  0x1b   :  { %142 = vmatpush.msra.mxu2 %v75_v43 }
  0x1c   :  { %103 = vmatpush.msra.mxu0 %v42_v44  ;;  %123 = vmatpush.msra.mxu1 %v58_v45 }
  0x1d   :  { %143 = vmatpush.msra.mxu2 %v74_v46 }
  0x1e   :  { %104 = vmatpush.msra.mxu0 %v41_v47  ;;  %124 = vmatpush.msra.mxu1 %v57_v48 }
  0x1f   :  { %144 = vmatpush.msra.mxu2 %v73_v49 }
  0x20   :  { %105 = vmatpush.msra.mxu0 %v40_v50  ;;  %125 = vmatpush.msra.mxu1 %v56_v51 }
  0x21   :  { %145 = vmatpush.msra.mxu2 %v72_v52 }
  0x22   :  { %106 = vmatpush.msra.mxu0 %v39_v53  ;;  %126 = vmatpush.msra.mxu1 %v55_v54 }
  0x23   :  { %146 = vmatpush.msra.mxu2 %v71_v55 }
  0x7c   :  { %v24_v56 = vpop.xlane.xlu0 %23 }
  0x7d   :  { %v25_v57 = vadd.f32 1e-12, %v24_v56 }
  0x7f   :  { %171 = vrsqrt.f32 %v25_v57  ;;  %vm32_vm1 = vweird.f32 %v25_v57 }
  0x85   :  { %v172_v58 = vpop.eup %171 }
  0x86   :  { %v27_v59 = vmul.f32 %v172_v58, %v25_v57  ;;  %vm33_vm0 = vweird.f32 %v172_v58 }
  0x87   :  { %vm34_vm2 = vmor %vm32_vm1, %vm33_vm0 }
  0x88   :  { %v28_v60 = vmul.f32 %v172_v58, %v27_v59 }
  0x8a   :  { %v29_v61 = vmul.f32 0.5, %v28_v60 }
  0x8c   :  { %v30_v62 = vsub.f32 1.5, %v29_v61 }
  0x8e   :  { %v31_v63 = vmul.f32 %v172_v58, %v30_v62 }
  0x90   :  { %v35_v3 = vsel %vm34_vm2, %v172_v58, %v31_v63 }
  0x91   :  { %v36_v4 = vmul.f32 %v35_v3, %v223_v0  ;;  %v37_v5 = vmul.f32 %v35_v3, %v228_v1  ;;  %v38_v6 = vmul.f32 %v35_v3, %v233_v2 }
  0x93   :  { %107 = vmatmul.f32.vlgmr.msra.gmra.mxu0 %v36_v4  ;;  %127 = vmatmul.f32.vlgmr.msra.gmra.mxu1 %v37_v5 }
  0x94   :  { %147 = vmatmul.f32.vlgmr.msra.gmra.mxu2 %v38_v6 }
 0x110   :  { %v108_v8 = vpop.f32.mrf.mxu0  ;;  %v128_v10 = vpop.f32.mrf.mxu1 }
 0x111   :  { %v109_v9 = vadd.f32 %v170_v7, %v108_v8 }
 0x113   :  { %v129_v0 = vadd.f32 %v128_v10, %v109_v9 }
 0x117   :  { %v148_v1 = vpop.f32.mrf.mxu2 }
 0x118   :  { %v149_v2 = vadd.f32 %v148_v1, %v129_v0 }
 0x11a   :  { %152 = vst.msk [vmem:[#allocation2] sm:$0xff] %vm151_vm3, %v149_v2 }
 0x11b   :  { %163 = dma.vmem_to_hbm [thread:$0]  %s159_s4, 128, %s161_s7, [#allocation3]  }
 0x11c   :  { %197 = dma.done.wait [#allocation3], 128  }
 0x11d   :  { %198 = vsyncadd [#allocation3], 4294967168 }
 0x11e   :  { %168 = vsyncpa [#allocation3], 1 }

</bundles_post_ra>
